<compile_context>
chip_gen: v7x
topology: tpu7x:2x2x1
jax: 0.10.0
libtpu: 0.0.40
codegen_flags: <defaults>
</compile_context>

<pallas_src>
import functools

import jax
import jax.numpy as jnp
from jax.experimental import pallas as pl
from jax.experimental.pallas import tpu as pltpu

ALPHA = 0.75
GAMMA = 2.0
CLASS_WEIGHTS = (1.0, 30.0)  # hardcoded in the PyTorch module (=> C == 2)

_LANES = 128
_SUBLANES = 8
_ROW_ALIGN = 32                      # int8 sublane packing => row tile multiple of 32
_MIN_PALLAS_ELEMS = _ROW_ALIGN * _LANES   # below this, pure JAX is strictly faster


def _round_up(a, b):
    return -(-a // b) * b


def _focal_loss_kernel(x_ref, t_ref, o_ref, *, alpha, gamma, n_valid,
                       tiles_per_split):
    # x_ref: (TM, 128) logits  (lane-dense flatten of the (M, 2) logits)
    # t_ref: (TM, 128) int8 targets (repeat-interleaved per class)
    # o_ref: (8, 128) f32 partial-sum accumulator, resident across the t axis
    c = pl.program_id(0)
    t = pl.program_id(1)

    @pl.when(t == 0)
    def _():
        o_ref[...] = jnp.zeros_like(o_ref)

    x = x_ref[...].astype(jnp.float32)
    tgt = t_ref[...].astype(jnp.int32)          # values {0,1}; garbage lanes masked below
    tm, lanes = x.shape

    row = jax.lax.broadcasted_iota(jnp.int32, (tm, lanes), 0)
    lane = jax.lax.broadcasted_iota(jnp.int32, (tm, lanes), 1)

    # Global flat element index.  This masks (a) the padded tail when n_elems is
    # not a multiple of 128, (b) garbage rows of a partial last DMA block, and
    # (c) whole over-run tiles when total_tiles % n_core_splits != 0.
    logical_tile = c * tiles_per_split + t
    elem_idx = logical_tile * (tm * lanes) + row * lanes + lane
    valid = elem_idx < n_valid

    # Class index of a flattened element is its flat-index parity; the lane
    # count (128) is even so this reduces to (lane & 1).
    cls = lane & 1
    cw = jnp.where(cls == 1, CLASS_WEIGHTS[1], CLASS_WEIGHTS[0]).astype(jnp.float32)
    # one_hot(targets, 2) * class_weights
    tmat = jnp.where(cls == tgt, cw, 0.0)

    # binary_cross_entropy_with_logits, reduction='none'
    # (log(1+e) with e = exp(-|x|) <= 1; log1p-vs-log difference is far below
    #  the comparison tolerance and keeps the op set minimal for Mosaic.)
    bce = jnp.maximum(x, 0.0) - x * tmat + jnp.log(1.0 + jnp.exp(-jnp.abs(x)))

    # focal modulation (gamma == 2 fast path: two muls instead of pow)
    # TODO(synk): if this ever becomes EUP-bound (post int8/bf16, most likely v7x),
    # reuse e = exp(-|x|): bce = max(x,0) - x*t + log1p(e) and
    # pt = exp(x*t - max(x,0)) * pl.reciprocal(1 + e, approx=True).
    pt = jnp.exp(-bce)
    omp = 1.0 - pt
    mod = omp * omp if gamma == 2.0 else jnp.power(omp, gamma)
    f_loss = jnp.where(valid, alpha * mod * bce, 0.0)   # select, NOT multiply

    # Reduce only along the vreg-repeat (sublane-tile) axis: pure VPU adds into
    # the resident (8, 128) output block.  The single cross-lane reduce happens
    # once, on the tiny (n_splits*8, 128) result, outside the kernel.
    o_ref[...] += f_loss.reshape(tm // _SUBLANES, _SUBLANES, lanes).sum(axis=0)


def _focal_loss_elementwise(inputs, targets, alpha=ALPHA, gamma=GAMMA):
    """Pure-JAX per-element focal loss mirroring the PyTorch module."""
    C = inputs.shape[-1]
    one_hot = jax.nn.one_hot(targets, C, dtype=jnp.float32)
    cw = jnp.asarray(CLASS_WEIGHTS, jnp.float32)
    t = one_hot * cw
    x = inputs.astype(jnp.float32)
    bce = jnp.maximum(x, 0.0) - x * t + jnp.log1p(jnp.exp(-jnp.abs(x)))
    pt = jnp.exp(-bce)
    omp = 1.0 - pt
    mod = omp * omp if gamma == 2.0 else jnp.power(omp, gamma)
    return alpha * mod * bce


def _focal_loss_ref(inputs, targets, alpha=ALPHA, gamma=GAMMA):
    return jnp.mean(_focal_loss_elementwise(inputs, targets, alpha, gamma))


def focal_loss(inputs, targets, alpha=ALPHA, gamma=GAMMA, reduction='mean', *,
               tile_rows=2048, n_core_splits=1, min_pallas_elems=65536):
    """inputs: (..., 2) float (f32 or bf16) logits, targets: (...) int class ids.

    Implements the module's forward pass for reduction in {'mean', 'sum'}.
    Set n_core_splits=2 on v7x (2 TensorCores); leave 1 on v5e/v6e.
    """
    C = inputs.shape[-1]
    assert C == 2, "class_weights in the reference module are hardcoded for 2 classes"
    if reduction not in ('mean', 'sum'):
        # TODO(synk): reduction='none' (full per-element output tensor) not implemented.
        raise NotImplementedError("only reduction='mean'/'sum' are implemented")

    n_elems = inputs.size

    # Small-input fast path: fixed pallas_call overhead dominates tiny losses.
    if n_elems < max(int(min_pallas_elems), _MIN_PALLAS_ELEMS):
        f = _focal_loss_elementwise(inputs, targets, alpha, gamma)
        return jnp.mean(f) if reduction == 'mean' else jnp.sum(f)

    # Lane-dense packing: (rows, 128).  Free (bitcast) reshape when n_elems is a
    # multiple of 128; otherwise one minimal pad-copy for the ragged tail.
    x_flat = inputs.reshape(-1)
    t_rep = jnp.repeat(targets.reshape(-1).astype(jnp.int8), C)   # 1 B/elem
    n_padded = _round_up(n_elems, _LANES)
    if n_padded != n_elems:
        x_flat = jnp.pad(x_flat, (0, n_padded - n_elems))
        t_rep = jnp.pad(t_rep, (0, n_padded - n_elems))
    rows = n_padded // _LANES
    x2 = x_flat.reshape(rows, _LANES)
    t2 = t_rep.reshape(rows, _LANES)

    # Row tile: multiple of 32 (int8 packing), never larger than the array
    # (rows >= 32 is guaranteed by the small-input floor above).
    assert rows >= _ROW_ALIGN
    tm = min(int(tile_rows), rows)
    tm = max(_ROW_ALIGN, (tm // _ROW_ALIGN) * _ROW_ALIGN)
    total_tiles = pl.cdiv(rows, tm)
    n_core_splits = max(1, min(int(n_core_splits), int(total_tiles)))
    tiles_per_split = pl.cdiv(total_tiles, n_core_splits)

    def _in_index(c, t):
        # Clamp so an over-run tile (total_tiles % n_core_splits != 0) re-reads
        # the last in-bounds block; the kernel masks its contribution to zero.
        return (jnp.minimum(c * tiles_per_split + t, total_tiles - 1), 0)

    kernel = functools.partial(
        _focal_loss_kernel, alpha=float(alpha), gamma=float(gamma),
        n_valid=int(n_elems), tiles_per_split=int(tiles_per_split))

    partial_sums = pl.pallas_call(
        kernel,
        out_shape=jax.ShapeDtypeStruct((n_core_splits * _SUBLANES, _LANES),
                                       jnp.float32),
        grid_spec=pltpu.PrefetchScalarGridSpec(
            num_scalar_prefetch=0,
            grid=(n_core_splits, tiles_per_split),
            in_specs=[
                pl.BlockSpec((tm, _LANES), _in_index),
                pl.BlockSpec((tm, _LANES), _in_index),
            ],
            out_specs=pl.BlockSpec((_SUBLANES, _LANES), lambda c, t: (c, 0)),
        ),
        compiler_params=pltpu.CompilerParams(
            dimension_semantics=("parallel", "arbitrary"),
            vmem_limit_bytes=32 * 1024 * 1024,
        ),
    )(x2, t2)

    total = jnp.sum(partial_sums)
    if reduction == 'sum':
        return total
    return total / jnp.float32(n_elems)


if __name__ == "__main__":
    key = jax.random.PRNGKey(0)
    ks = jax.random.split(key, 8)
    C = 2

    def check(loss, ref, tag):
        loss = jax.block_until_ready(loss)
        ref = jax.block_until_ready(ref)
        assert jnp.isfinite(loss), f"{tag}: non-finite loss {loss}"
        assert jnp.allclose(loss, ref, rtol=1e-4, atol=1e-6), (tag, loss, ref)

    # 1) Module-sized tiny input (batch=2, seq=16): pure-JAX fast path.
    logits = 0.1 * jax.random.normal(ks[0], (2, 16, C), dtype=jnp.float32)
    targets = jax.random.randint(ks[1], (2, 16), 0, C, dtype=jnp.int32)
    check(focal_loss(logits, targets), _focal_loss_ref(logits, targets), "fastpath")

    # 2) Pallas path, lane-exact shape (n_elems % 128 == 0), single tile, f32.
    logits = 0.1 * jax.random.normal(ks[2], (2, 2048, C), dtype=jnp.float32)
    targets = jax.random.randint(ks[3], (2, 2048), 0, C, dtype=jnp.int32)
    check(focal_loss(logits, targets, min_pallas_elems=0),
          _focal_loss_ref(logits, targets), "pallas_exact")

    # 3) Pallas path, bf16 logits end-to-end (in-kernel f32 upcast only).
    logits_bf16 = logits.astype(jnp.bfloat16)
    check(focal_loss(logits_bf16, targets, min_pallas_elems=0),
          _focal_loss_ref(logits_bf16, targets), "pallas_bf16")

    # 4) Pallas path, ragged tail + multi-tile accumulation + 2-way core split
    #    with a clamped/masked over-run tile (total_tiles=3, splits=2).
    logits = 0.1 * jax.random.normal(ks[4], (2, 2500, C), dtype=jnp.float32)
    targets = jax.random.randint(ks[5], (2, 2500), 0, C, dtype=jnp.int32)
    check(focal_loss(logits, targets, min_pallas_elems=0, tile_rows=32,
                     n_core_splits=2),
          _focal_loss_ref(logits, targets), "pallas_ragged_split")

    # 5) reduction='sum' sanity check through the Pallas path.
    check(focal_loss(logits, targets, reduction='sum', min_pallas_elems=0),
          jnp.sum(_focal_loss_elementwise(logits, targets)), "pallas_sum")

    print("KERNEL_OK")
</pallas_src>

<mosaic_0001>
module attributes {stable_mosaic.version = 11 : i64} {
  func.func @_focal_loss_kernel(%arg0: i32, %arg1: i32, %arg2: memref<64x128xf32, #tpu.memory_space<vmem>>, %arg3: memref<64x128xi8, #tpu.memory_space<vmem>>, %arg4: memref<8x128xf32, #tpu.memory_space<vmem>>) attributes {dimension_semantics = [#tpu.dimension_semantics<parallel>, #tpu.dimension_semantics<arbitrary>], iteration_bounds = array<i64: 1, 1>, scalar_prefetch = 0 : i64, scratch_operands = 0 : i64, tpu.core_type = #tpu.core_type<tc>, window_params = [{transform_indices = @transform_0, window_bounds = array<i64: 64, 128>}, {transform_indices = @transform_1, window_bounds = array<i64: 64, 128>}, {transform_indices = @transform_2, window_bounds = array<i64: 8, 128>}]} {
    %c0_i32 = arith.constant 0 : i32
    %0 = arith.cmpi eq, %arg1, %c0_i32 : i32
    %1 = arith.extui %0 : i1 to i32
    %c0_i32_0 = arith.constant 0 : i32
    %2 = arith.cmpi ne, %1, %c0_i32_0 : i32
    scf.if %2 {
      %cst_21 = arith.constant 0.000000e+00 : f32
      %56 = vector.broadcast %cst_21 : f32 to vector<8x128xf32>
      %c0_22 = arith.constant 0 : index
      %c0_23 = arith.constant 0 : index
      %57 = vector.load %arg4[%c0_22, %c0_23] : memref<8x128xf32, #tpu.memory_space<vmem>>, vector<8x128xf32>
      tpu.vector_store %arg4[%c0_22, %c0_23], %56 {strides = array<i32>} : memref<8x128xf32, #tpu.memory_space<vmem>>, vector<8x128xf32>,
    } else {
    }
    %c0 = arith.constant 0 : index
    %c0_1 = arith.constant 0 : index
    %3 = vector.load %arg2[%c0, %c0_1] : memref<64x128xf32, #tpu.memory_space<vmem>>, vector<64x128xf32>
    %c0_2 = arith.constant 0 : index
    %c0_3 = arith.constant 0 : index
    %4 = vector.load %arg3[%c0_2, %c0_3] : memref<64x128xi8, #tpu.memory_space<vmem>>, vector<64x128xi8>
    %5 = arith.extsi %4 : vector<64x128xi8> to vector<64x128xi32>
    %6 = tpu.iota {dimensions = array<i32: 0>} : vector<64x128xi32>
    %7 = tpu.iota {dimensions = array<i32: 1>} : vector<64x128xi32>
    %c1_i32 = arith.constant 1 : i32
    %8 = arith.muli %arg0, %c1_i32 : i32
    %9 = arith.addi %8, %arg1 : i32
    %c8192_i32 = arith.constant 8192 : i32
    %10 = arith.muli %9, %c8192_i32 : i32
    %c128_i32 = arith.constant 128 : i32
    %11 = vector.broadcast %c128_i32 : i32 to vector<64x128xi32>
    %12 = arith.muli %6, %11 : vector<64x128xi32>
    %13 = vector.broadcast %10 : i32 to vector<64x128xi32>
    %14 = arith.addi %13, %12 : vector<64x128xi32>
    %15 = arith.addi %14, %7 : vector<64x128xi32>
    %c8192_i32_4 = arith.constant 8192 : i32
    %16 = vector.broadcast %c8192_i32_4 : i32 to vector<64x128xi32>
    %17 = arith.cmpi slt, %15, %16 : vector<64x128xi32>
    %c1_i32_5 = arith.constant 1 : i32
    %18 = vector.broadcast %c1_i32_5 : i32 to vector<64x128xi32>
    %19 = arith.andi %7, %18 : vector<64x128xi32>
    %c1_i32_6 = arith.constant 1 : i32
    %20 = vector.broadcast %c1_i32_6 : i32 to vector<64x128xi32>
    %21 = arith.cmpi eq, %19, %20 : vector<64x128xi32>
    %cst = arith.constant 3.000000e+01 : f32
    %cst_7 = arith.constant 1.000000e+00 : f32
    %22 = vector.broadcast %cst : f32 to vector<64x128xf32>
    %23 = vector.broadcast %cst_7 : f32 to vector<64x128xf32>
    %24 = arith.select %21, %22, %23 : vector<64x128xi1>, vector<64x128xf32>
    %25 = arith.cmpi eq, %19, %5 : vector<64x128xi32>
    %cst_8 = arith.constant 0.000000e+00 : f32
    %26 = vector.broadcast %cst_8 : f32 to vector<64x128xf32>
    %27 = arith.select %25, %24, %26 : vector<64x128xi1>, vector<64x128xf32>
    %cst_9 = arith.constant 0.000000e+00 : f32
    %28 = vector.broadcast %cst_9 : f32 to vector<64x128xf32>
    %29 = arith.maximumf %3, %28 : vector<64x128xf32>
    %30 = arith.mulf %3, %27 : vector<64x128xf32>
    %31 = arith.subf %29, %30 : vector<64x128xf32>
    %32 = math.absf %3 : vector<64x128xf32>
    %cst_10 = arith.constant 0.000000e+00 : f32
    %33 = vector.broadcast %cst_10 : f32 to vector<64x128xf32>
    %34 = arith.subf %33, %32 : vector<64x128xf32>
    %35 = math.exp %34 : vector<64x128xf32>
    %cst_11 = arith.constant 1.000000e+00 : f32
    %36 = vector.broadcast %cst_11 : f32 to vector<64x128xf32>
    %37 = arith.addf %36, %35 : vector<64x128xf32>
    %38 = math.log %37 : vector<64x128xf32>
    %39 = arith.addf %31, %38 : vector<64x128xf32>
    %cst_12 = arith.constant 0.000000e+00 : f32
    %40 = vector.broadcast %cst_12 : f32 to vector<64x128xf32>
    %41 = arith.subf %40, %39 : vector<64x128xf32>
    %42 = math.exp %41 : vector<64x128xf32>
    %cst_13 = arith.constant 1.000000e+00 : f32
    %43 = vector.broadcast %cst_13 : f32 to vector<64x128xf32>
    %44 = arith.subf %43, %42 : vector<64x128xf32>
    %45 = arith.mulf %44, %44 : vector<64x128xf32>
    %cst_14 = arith.constant 7.500000e-01 : f32
    %46 = vector.broadcast %cst_14 : f32 to vector<64x128xf32>
    %47 = arith.mulf %46, %45 : vector<64x128xf32>
    %48 = arith.mulf %47, %39 : vector<64x128xf32>
    %cst_15 = arith.constant 0.000000e+00 : f32
    %49 = vector.broadcast %cst_15 : f32 to vector<64x128xf32>
    %50 = arith.select %17, %48, %49 : vector<64x128xi1>, vector<64x128xf32>
    %c0_16 = arith.constant 0 : index
    %c0_17 = arith.constant 0 : index
    %51 = vector.load %arg4[%c0_16, %c0_17] : memref<8x128xf32, #tpu.memory_space<vmem>>, vector<8x128xf32>
    %52 = vector.shape_cast %50 : vector<64x128xf32> to vector<8x8x128xf32>
    %cst_18 = arith.constant dense<0.000000e+00> : vector<8x128xf32>
    %53 = vector.multi_reduction <add>, %52, %cst_18 [0] : vector<8x8x128xf32> to vector<8x128xf32>
    %54 = arith.addf %51, %53 : vector<8x128xf32>
    %c0_19 = arith.constant 0 : index
    %c0_20 = arith.constant 0 : index
    %55 = vector.load %arg4[%c0_19, %c0_20] : memref<8x128xf32, #tpu.memory_space<vmem>>, vector<8x128xf32>
    tpu.vector_store %arg4[%c0_19, %c0_20], %54 {strides = array<i32>} : memref<8x128xf32, #tpu.memory_space<vmem>>, vector<8x128xf32>,
    return
  }
  func.func @transform_0(%arg0: i32, %arg1: i32) -> (i32, i32) {
    %c1_i32 = arith.constant 1 : i32
    %0 = arith.muli %arg0, %c1_i32 : i32
    %1 = arith.addi %0, %arg1 : i32
    %c0_i32 = arith.constant 0 : i32
    %2 = arith.minsi %1, %c0_i32 : i32
    %c0_i32_0 = arith.constant 0 : i32
    %c0_i32_1 = arith.constant 0 : i32
    return %2, %c0_i32_0 : i32, i32
  }
  func.func @transform_1(%arg0: i32, %arg1: i32) -> (i32, i32) {
    %c1_i32 = arith.constant 1 : i32
    %0 = arith.muli %arg0, %c1_i32 : i32
    %1 = arith.addi %0, %arg1 : i32
    %c0_i32 = arith.constant 0 : i32
    %2 = arith.minsi %1, %c0_i32 : i32
    %c0_i32_0 = arith.constant 0 : i32
    %c0_i32_1 = arith.constant 0 : i32
    return %2, %c0_i32_0 : i32, i32
  }
  func.func @transform_2(%arg0: i32, %arg1: i32) -> (i32, i32) {
    %c0_i32 = arith.constant 0 : i32
    %c0_i32_0 = arith.constant 0 : i32
    return %arg0, %c0_i32 : i32, i32
  }
}

</mosaic_0001>

<bundles_post_ra>
// kernel: tpu_custom_call.1
= control target key start
LH: loop header
LB: loop body
LE: loop exit
PB: predicated region body
PF: predicated region fallthrough
CT: control target
= control target key end

     0   :  { %7 = vsyncpa [#allocation3], 0  ;;  %s662_s0 = inlined_call_operand.hbm [shape: f32[64,128], index: 0, kind: input, shape index: {}]   ;;  %s663_s1 = inlined_call_operand.hbm [shape: s8[64,128], index: 1, kind: input, shape index: {}]   ;;  %s664_s2 = inlined_call_operand.hbm [shape: f32[8,128], index: 2, kind: output, shape index: {}]  }
   0x1   :  { %8 = vsyncpa [#allocation6], 0 }
   0x2   :  { %9 = vsyncpa [#allocation4], 0  ;;  %s457_s9 = smov [#allocation2]   ;;  %s385_s13 = scalar_lea.hbm %s662_s0, 1024 }
   0x3   :  { %s21_s10 = sshll.u32 %s457_s9, 4  ;;  %p386_p0 = scmp.ne.s32.totalorder %s662_s0, %s385_s13  ;;  %s22_s10 = int_to_ptr.vmem [resolvable:$true] %s21_s10 }
   0x4   :  { %p389_p1 = scmp.lt.u32.totalorder %s385_s13, %s662_s0 }
   0x6   :  { %p391_p2 = pnand %p389_p1, %p386_p0 }
   0x8   :  { %394 = shalt.err (!%p391_p2)
}
   0x9   :  { %s395_s18 = scalar_lea.vmem %s22_s10, 1024  ;;  %p400_p4 = scmp.lt.s32.totalorder %s22_s10, %s22_s10 }
   0xa   :  { %p396_p3 = scmp.ne.s32.totalorder %s22_s10, %s395_s18  ;;  %p401_p5 = scmp.lt.s32.totalorder %s395_s18, %s395_s18 }
   0xc   :  { %p402_p6 = por %p401_p5, %p400_p4 }
   0xe   :  { %p403_p7 = pnand %p402_p6, %p396_p3 }
  0x10   :  { %406 = shalt.err (!%p403_p7)
}
  0x11   :  { %s458_s19 = smov 128   ;;  %s459_s20 = smov 8  }
  0x12   :  { %27 = dma.hbm_to_vmem [thread:$0]  %s662_s0, 1024, %s22_s10, [#allocation3], %s458_s19, %s458_s19, %s459_s20  }
  0x13   :  { %s460_s23 = smov [#allocation5]   ;;  %s407_s27 = scalar_lea.hbm %s663_s1, 256 }
  0x14   :  { %s39_s24 = sshll.u32 %s460_s23, 4  ;;  %p408_p8 = scmp.ne.s32.totalorder %s663_s1, %s407_s27  ;;  %s40_s24 = int_to_ptr.vmem [resolvable:$true] %s39_s24 }
  0x15   :  { %p411_p9 = scmp.lt.u32.totalorder %s407_s27, %s663_s1 }
  0x17   :  { %p413_p10 = pnand %p411_p9, %p408_p8 }
  0x19   :  { %416 = shalt.err (!%p413_p10)
}
  0x1a   :  { %s417_s4 = scalar_lea.vmem %s40_s24, 256  ;;  %p422_p12 = scmp.lt.s32.totalorder %s40_s24, %s40_s24 }
  0x1b   :  { %p418_p11 = scmp.ne.s32.totalorder %s40_s24, %s417_s4  ;;  %p423_p13 = scmp.lt.s32.totalorder %s417_s4, %s417_s4 }
  0x1d   :  { %p424_p0 = por %p423_p13, %p422_p12 }
  0x1f   :  { %p425_p1 = pnand %p424_p0, %p418_p11 }
  0x21   :  { %428 = shalt.err (!%p425_p1)
}
  0x22   :  { %45 = dma.hbm_to_vmem [thread:$0]  %s663_s1, 256, %s40_s24, [#allocation6], %s458_s19, %s458_s19, %s459_s20  }
  0x23   :  { %451 = dma.done.wait [#allocation3], 1024  }
  0x24   :  { %452 = vsyncadd [#allocation3], 4294966272 }
  0x25   :  { %453 = dma.done.wait [#allocation6], 256  }
  0x26   :  { %454 = vsyncadd [#allocation6], 4294967040  ;;  %v502_v0 = vld [vmem:[#allocation2] sm:$0xff]  ;;  %v504_v1 = vld [vmem:[#allocation2 + $0x8] sm:$0xff]  ;;  %v83_v11 = vlaneseq  ;;  %v461_v49 = vmov 1.0   ;;  %s462_s1 = smov [#allocation7]  }
  0x27   :  { %v506_v2 = vld [vmem:[#allocation2 + $0x10] sm:$0xff]  ;;  %v508_v3 = vld [vmem:[#allocation2 + $0x18] sm:$0xff]  ;;  %v510_v4 = vld [vmem:[#allocation2 + $0x20] sm:$0xff]  ;;  %v172_v8 = vand.u32 2147483647, %v502_v0  ;;  %s316_s6 = sshll.u32 %s462_s1, 4  ;;  %s317_s6 = int_to_ptr.vmem [resolvable:$true] %s316_s6 }
  0x28   :  { %v512_v5 = vld [vmem:[#allocation2 + $0x28] sm:$0xff]  ;;  %v514_v6 = vld [vmem:[#allocation2 + $0x30] sm:$0xff]  ;;  %v516_v7 = vld [vmem:[#allocation2 + $0x38] sm:$0xff]  ;;  %v173_v9 = vand.u32 2147483647, %v504_v1  ;;  %v527_v30 = vand.u32 127, %v83_v11  ;;  %p434_p3 = scmp.lt.s32.totalorder %s317_s6, %s317_s6 }
  0x29   :  { %v174_v10 = vand.u32 2147483647, %v506_v2  ;;  %v175_v12 = vand.u32 2147483647, %v508_v3  ;;  %v176_v13 = vand.u32 2147483647, %v510_v4 }
  0x2a   :  { %v177_v14 = vand.u32 2147483647, %v512_v5  ;;  %v178_v15 = vand.u32 2147483647, %v514_v6  ;;  %v179_v16 = vand.u32 2147483647, %v516_v7 }
  0x2b   :  { %v180_v17 = vsub.f32 0.0, %v172_v8  ;;  %v181_v18 = vsub.f32 0.0, %v173_v9  ;;  %v182_v19 = vsub.f32 0.0, %v174_v10  ;;  %v183_v20 = vsub.f32 0.0, %v175_v12  ;;  %v73_v34 = vld [vmem:[#allocation5] sm:$0xff]  ;;  %v74_v36 = vld [vmem:[#allocation5 + $0x8] sm:$0xff] }
  0x2c   :  { %v184_v21 = vsub.f32 0.0, %v176_v13  ;;  %v185_v22 = vsub.f32 0.0, %v177_v14  ;;  %v186_v23 = vsub.f32 0.0, %v178_v15  ;;  %v187_v26 = vsub.f32 0.0, %v179_v16  ;;  %s429_s7 = scalar_lea.vmem %s317_s6, 128 }
  0x2d   :  { %v188_v24 = vmul.f32 1.442695, %v180_v17  ;;  %v190_v25 = vmul.f32 1.442695, %v181_v18  ;;  %v192_v27 = vmul.f32 1.442695, %v182_v19  ;;  %v75_v37 = vunpack.c.0.s8 %v73_v34  ;;  %p430_p2 = scmp.ne.s32.totalorder %s317_s6, %s429_s7  ;;  %p435_p4 = scmp.lt.s32.totalorder %s429_s7, %s429_s7 }
  0x2e   :  { %v194_v28 = vmul.f32 1.442695, %v183_v20  ;;  %v196_v29 = vmul.f32 1.442695, %v184_v21  ;;  %v198_v31 = vmul.f32 1.442695, %v185_v22  ;;  %v76_v38 = vunpack.c.1.s8 %v73_v34 }
  0x2f   :  { %337 = vpow2.f32 %v188_v24  ;;  %v200_v32 = vmul.f32 1.442695, %v186_v23  ;;  %v202_v33 = vmul.f32 1.442695, %v187_v26  ;;  %v129_v35 = vand.u32 1, %v527_v30  ;;  %p436_p5 = por %p435_p4, %p434_p3 }
  0x30   :  { %339 = vpow2.f32 %v190_v25  ;;  %v77_v39 = vunpack.c.2.s8 %v73_v34  ;;  %v78_v40 = vunpack.c.3.s8 %v73_v34  ;;  %v79_v42 = vunpack.c.0.s8 %v74_v36 }
  0x31   :  { %341 = vpow2.f32 %v192_v27  ;;  %vm130_vm0 = vcmp.eq.s32.totalorder %v129_v35, 1  ;;  %v80_v43 = vunpack.c.1.s8 %v74_v36  ;;  %v81_v45 = vunpack.c.2.s8 %v74_v36  ;;  %p437_p6 = pnand %p436_p5, %p430_p2 }
  0x32   :  { %343 = vpow2.f32 %v194_v28  ;;  %v82_v46 = vunpack.c.3.s8 %v74_v36  ;;  %v131_v50 = vsel %vm130_vm0, 30.0, %v461_v49  ;;  %vm530_vm1 = vcmp.eq.s32.totalorder %v129_v35, %v75_v37 }
  0x33   :  { %345 = vpow2.f32 %v196_v29  ;;  %vm534_vm2 = vcmp.eq.s32.totalorder %v129_v35, %v76_v38  ;;  %vm538_vm3 = vcmp.eq.s32.totalorder %v129_v35, %v77_v39  ;;  %vm542_vm4 = vcmp.eq.s32.totalorder %v129_v35, %v78_v40 }
  0x34   :  { %347 = vpow2.f32 %v198_v31  ;;  %vm546_vm5 = vcmp.eq.s32.totalorder %v129_v35, %v79_v42  ;;  %vm550_vm6 = vcmp.eq.s32.totalorder %v129_v35, %v80_v43  ;;  %vm554_vm7 = vcmp.eq.s32.totalorder %v129_v35, %v81_v45 }
  0x35   :  { %349 = vpow2.f32 %v200_v32  ;;  %v140_v8 = vsel %vm530_vm1, %v131_v50, 0.0  ;;  %vm560_vm8 = vcmp.eq.s32.totalorder %v129_v35, %v82_v46  ;;  %v141_v13 = vsel %vm534_vm2, %v131_v50, 0.0 }
  0x36   :  { %351 = vpow2.f32 %v202_v33  ;;  %v142_v16 = vsel %vm538_vm3, %v131_v50, 0.0  ;;  %v143_v17 = vsel %vm542_vm4, %v131_v50, 0.0  ;;  %v148_v19 = vmax.f32 %v502_v0, 0.0 }
  0x37   :  { %v156_v20 = vmul.f32 %v140_v8, %v502_v0  ;;  %v144_v22 = vsel %vm546_vm5, %v131_v50, 0.0  ;;  %v149_v23 = vmax.f32 %v504_v1, 0.0  ;;  %v157_v24 = vmul.f32 %v141_v13, %v504_v1 }
  0x38   :  { %v145_v25 = vsel %vm550_vm6, %v131_v50, 0.0  ;;  %v150_v26 = vmax.f32 %v506_v2, 0.0  ;;  %v158_v27 = vmul.f32 %v142_v16, %v506_v2  ;;  %v146_v0 = vsel %vm554_vm7, %v131_v50, 0.0 }
  0x39   :  { %v338_v41 = vpop.eup %337  ;;  %v151_v28 = vmax.f32 %v508_v3, 0.0  ;;  %v159_v29 = vmul.f32 %v143_v17, %v508_v3  ;;  %v147_v31 = vsel %vm560_vm8, %v131_v50, 0.0  ;;  %v152_v1 = vmax.f32 %v510_v4, 0.0 }
  0x3a   :  { %v340_v44 = vpop.eup %339  ;;  %v204_v47 = vadd.f32 1.0, %v338_v41  ;;  %v160_v32 = vmul.f32 %v144_v22, %v510_v4  ;;  %v164_v33 = vsub.f32 %v148_v19, %v156_v20  ;;  %v589_v35 = vshrl.u32 %v83_v11, 7 }
  0x3b   :  { %v342_v48 = vpop.eup %341  ;;  %v205_v53 = vadd.f32 1.0, %v340_v44  ;;  %v153_v2 = vmax.f32 %v512_v5, 0.0  ;;  %v161_v36 = vmul.f32 %v145_v25, %v512_v5  ;;  %v165_v37 = vsub.f32 %v149_v23, %v157_v24 }
  0x3c   :  { %v344_v54 = vpop.eup %343  ;;  %v206_v57 = vadd.f32 1.0, %v342_v48  ;;  %353 = vlog2.f32 %v204_v47  ;;  %v154_v3 = vmax.f32 %v514_v6, 0.0  ;;  %v162_v39 = vmul.f32 %v146_v0, %v514_v6 }
  0x3d   :  { %v346_v58 = vpop.eup %345  ;;  %v207_v61 = vadd.f32 1.0, %v344_v54  ;;  %355 = vlog2.f32 %v205_v53  ;;  %v166_v40 = vsub.f32 %v150_v26, %v158_v27  ;;  %v155_v4 = vmax.f32 %v516_v7, 0.0 }
  0x3e   :  { %v348_v62 = vpop.eup %347  ;;  %v208_v9 = vadd.f32 1.0, %v346_v58  ;;  %357 = vlog2.f32 %v206_v57  ;;  %v163_v43 = vmul.f32 %v147_v31, %v516_v7  ;;  %v167_v44 = vsub.f32 %v151_v28, %v159_v29 }
  0x3f   :  { %v350_v10 = vpop.eup %349  ;;  %v209_v14 = vadd.f32 1.0, %v348_v62  ;;  %359 = vlog2.f32 %v207_v61  ;;  %v168_v46 = vsub.f32 %v152_v1, %v160_v32  ;;  %v85_v49 = vadd.s32 8, %v589_v35 }
  0x40   :  { %v352_v15 = vpop.eup %351  ;;  %v210_v18 = vadd.f32 1.0, %v350_v10  ;;  %361 = vlog2.f32 %v208_v9  ;;  %v169_v50 = vsub.f32 %v153_v2, %v161_v36  ;;  %v170_v53 = vsub.f32 %v154_v3, %v162_v39 }
  0x41   :  { %v211_v21 = vadd.f32 1.0, %v352_v15  ;;  %363 = vlog2.f32 %v209_v14  ;;  %v171_v57 = vsub.f32 %v155_v4, %v163_v43  ;;  %v87_v24 = vadd.s32 24, %v589_v35 }
  0x42   :  { %365 = vlog2.f32 %v210_v18  ;;  %v88_v27 = vadd.s32 32, %v589_v35  ;;  %v96_v0 = vmul.u32 128, %v589_v35  ;;  %v89_v29 = vadd.s32 40, %v589_v35 }
  0x43   :  { %367 = vlog2.f32 %v211_v21  ;;  %v86_v21 = vadd.s32 16, %v589_v35  ;;  %v90_v31 = vadd.s32 48, %v589_v35  ;;  %v97_v32 = vmul.u32 128, %v85_v49 }
  0x44   :  { %v91_v2 = vadd.s32 56, %v589_v35  ;;  %v100_v36 = vmul.u32 128, %v88_v27 }
  0x45   :  { %v102_v3 = vmul.u32 128, %v90_v31 }
  0x46   :  { %v354_v34 = vpop.eup %353 }
  0x47   :  { %v356_v38 = vpop.eup %355  ;;  %v213_v41 = vmul.f32 0.6931472, %v354_v34  ;;  %v99_v34 = vmul.u32 128, %v87_v24 }
  0x48   :  { %v358_v42 = vpop.eup %357  ;;  %v215_v11 = vmul.f32 0.6931472, %v356_v38  ;;  %v101_v38 = vmul.u32 128, %v89_v29 }
  0x49   :  { %v360_v45 = vpop.eup %359  ;;  %v217_v47 = vmul.f32 0.6931472, %v358_v42  ;;  %v597_v48 = vadd.f32 %v213_v41, %v164_v33  ;;  %v98_v33 = vmul.u32 128, %v86_v21  ;;  %v116_v4 = vadd.s32 %v99_v34, %v527_v30 }
  0x4a   :  { %v362_v5 = vpop.eup %361  ;;  %v219_v51 = vmul.f32 0.6931472, %v360_v45  ;;  %v600_v6 = vadd.f32 %v215_v11, %v165_v37  ;;  %v113_v37 = vadd.s32 %v96_v0, %v527_v30  ;;  %v103_v11 = vmul.u32 128, %v91_v2 }
  0x4b   :  { %v364_v52 = vpop.eup %363  ;;  %v221_v54 = vmul.f32 0.6931472, %v362_v5  ;;  %v602_v55 = vadd.f32 %v217_v47, %v166_v40  ;;  %v236_v7 = vsub.f32 0.0, %v597_v48  ;;  %v114_v40 = vadd.s32 %v97_v32, %v527_v30 }
  0x4c   :  { %v366_v56 = vpop.eup %365  ;;  %v223_v58 = vmul.f32 0.6931472, %v364_v52  ;;  %v605_v59 = vadd.f32 %v219_v51, %v167_v44  ;;  %v237_v60 = vsub.f32 0.0, %v600_v6  ;;  %v115_v41 = vadd.s32 %v98_v33, %v527_v30 }
  0x4d   :  { %v368_v61 = vpop.eup %367  ;;  %v225_v62 = vmul.f32 0.6931472, %v366_v56  ;;  %v608_v63 = vadd.f32 %v221_v54, %v168_v46  ;;  %v238_v8 = vsub.f32 0.0, %v602_v55  ;;  %v244_v9 = vmul.f32 1.442695, %v236_v7 }
  0x4e   :  { %v227_v10 = vmul.f32 0.6931472, %v368_v61  ;;  %v611_v12 = vadd.f32 %v223_v58, %v169_v50  ;;  %v239_v13 = vsub.f32 0.0, %v605_v59  ;;  %v246_v14 = vmul.f32 1.442695, %v237_v60 }
  0x4f   :  { %v614_v15 = vadd.f32 %v225_v62, %v170_v53  ;;  %v240_v16 = vsub.f32 0.0, %v608_v63  ;;  %369 = vpow2.f32 %v244_v9  ;;  %v248_v17 = vmul.f32 1.442695, %v238_v8 }
  0x50   :  { %v617_v18 = vadd.f32 %v227_v10, %v171_v57  ;;  %v241_v19 = vsub.f32 0.0, %v611_v12  ;;  %371 = vpow2.f32 %v246_v14  ;;  %v250_v20 = vmul.f32 1.442695, %v239_v13 }
  0x51   :  { %v242_v22 = vsub.f32 0.0, %v614_v15  ;;  %373 = vpow2.f32 %v248_v17  ;;  %v252_v23 = vmul.f32 1.442695, %v240_v16  ;;  %v117_v45 = vadd.s32 %v100_v36, %v527_v30 }
  0x52   :  { %v243_v25 = vsub.f32 0.0, %v617_v18  ;;  %375 = vpow2.f32 %v250_v20  ;;  %v254_v26 = vmul.f32 1.442695, %v241_v19  ;;  %vm121_vm9 = vcmp.lt.s32.totalorder %v113_v37, 8192 }
  0x53   :  { %377 = vpow2.f32 %v252_v23  ;;  %v256_v28 = vmul.f32 1.442695, %v242_v22  ;;  %v118_v47 = vadd.s32 %v101_v38, %v527_v30  ;;  %v119_v5 = vadd.s32 %v102_v3, %v527_v30 }
  0x54   :  { %379 = vpow2.f32 %v254_v26  ;;  %v258_v1 = vmul.f32 1.442695, %v243_v25  ;;  %vm122_vm10 = vcmp.lt.s32.totalorder %v114_v40, 8192  ;;  %vm123_vm11 = vcmp.lt.s32.totalorder %v115_v41, 8192 }
  0x55   :  { %381 = vpow2.f32 %v256_v28  ;;  %vm124_vm12 = vcmp.lt.s32.totalorder %v116_v4, 8192  ;;  %vm125_vm13 = vcmp.lt.s32.totalorder %v117_v45, 8192  ;;  %vm126_vm14 = vcmp.lt.s32.totalorder %v118_v47, 8192 }
  0x56   :  { %383 = vpow2.f32 %v258_v1  ;;  %vm127_vm15 = vcmp.lt.s32.totalorder %v119_v5, 8192 }
  0x59   :  { %v370_v39 = vpop.eup %369 }
  0x5a   :  { %v372_v42 = vpop.eup %371  ;;  %v260_v43 = vsub.f32 1.0, %v370_v39 }
  0x5b   :  { %v374_v44 = vpop.eup %373  ;;  %v261_v35 = vsub.f32 1.0, %v372_v42 }
  0x5c   :  { %v376_v46 = vpop.eup %375  ;;  %v262_v49 = vsub.f32 1.0, %v374_v44  ;;  %v268_v50 = vmul.f32 %v260_v43, %v260_v43 }
  0x5d   :  { %v378_v51 = vpop.eup %377  ;;  %v263_v52 = vsub.f32 1.0, %v376_v46  ;;  %v269_v53 = vmul.f32 %v261_v35, %v261_v35 }
  0x5e   :  { %v380_v54 = vpop.eup %379  ;;  %v264_v7 = vsub.f32 1.0, %v378_v51  ;;  %v270_v56 = vmul.f32 %v262_v49, %v262_v49  ;;  %v276_v57 = vmul.f32 0.75, %v268_v50 }
  0x5f   :  { %v382_v58 = vpop.eup %381  ;;  %v265_v60 = vsub.f32 1.0, %v380_v54  ;;  %v271_v61 = vmul.f32 %v263_v52, %v263_v52  ;;  %v277_v62 = vmul.f32 0.75, %v269_v53 }
  0x60   :  { %v384_v8 = vpop.eup %383  ;;  %v266_v9 = vsub.f32 1.0, %v382_v58  ;;  %v272_v10 = vmul.f32 %v264_v7, %v264_v7  ;;  %v278_v13 = vmul.f32 0.75, %v270_v56  ;;  %v284_v14 = vmul.f32 %v276_v57, %v597_v48 }
  0x61   :  { %v267_v16 = vsub.f32 1.0, %v384_v8  ;;  %v273_v17 = vmul.f32 %v265_v60, %v265_v60  ;;  %v279_v19 = vmul.f32 0.75, %v271_v61  ;;  %v285_v20 = vmul.f32 %v277_v62, %v600_v6 }
  0x62   :  { %v274_v21 = vmul.f32 %v266_v9, %v266_v9  ;;  %v280_v22 = vmul.f32 0.75, %v272_v10  ;;  %v286_v23 = vmul.f32 %v278_v13, %v602_v55  ;;  %v292_v24 = vsel %vm121_vm9, %v284_v14, 0.0 }
  0x63   :  { %v275_v25 = vmul.f32 %v267_v16, %v267_v16  ;;  %v281_v26 = vmul.f32 0.75, %v273_v17  ;;  %v287_v27 = vmul.f32 %v279_v19, %v605_v59  ;;  %v293_v0 = vsel %vm122_vm10, %v285_v20, 0.0 }
  0x64   :  { %v282_v28 = vmul.f32 0.75, %v274_v21  ;;  %v288_v48 = vmul.f32 %v280_v22, %v608_v63  ;;  %v294_v29 = vsel %vm123_vm11, %v286_v23, 0.0  ;;  %v301_v31 = vadd.f32 %v293_v0, %v292_v24 }
  0x65   :  { %v283_v1 = vmul.f32 0.75, %v275_v25  ;;  %v289_v6 = vmul.f32 %v281_v26, %v611_v12  ;;  %v295_v32 = vsel %vm124_vm12, %v287_v27, 0.0  ;;  %v120_v55 = vadd.s32 %v103_v11, %v527_v30 }
  0x66   :  { %v302_v33 = vadd.f32 %v301_v31, %v294_v29  ;;  %v290_v34 = vmul.f32 %v282_v28, %v614_v15  ;;  %v296_v59 = vsel %vm125_vm13, %v288_v48, 0.0 }
  0x67   :  { %v291_v63 = vmul.f32 %v283_v1, %v617_v18  ;;  %v297_v36 = vsel %vm126_vm14, %v289_v6, 0.0  ;;  %vm128_vm0 = vcmp.lt.s32.totalorder %v120_v55, 8192 }
  0x68   :  { %v303_v2 = vadd.f32 %v302_v33, %v295_v32  ;;  %v298_v38 = vsel %vm127_vm15, %v290_v34, 0.0 }
  0x69   :  { %v299_v12 = vsel %vm128_vm0, %v291_v63, 0.0 }
  0x6a   :  { %v304_v37 = vadd.f32 %v303_v2, %v296_v59 }
  0x6c   :  { %v305_v3 = vadd.f32 %v304_v37, %v297_v36 }
  0x6e   :  { %v306_v39 = vadd.f32 %v305_v3, %v298_v38 }
  0x70   :  { %v307_v30 = vadd.f32 %v306_v39, %v299_v12 }
  0x72   :  { %309 = vst [vmem:[#allocation7] sm:$0xff] %v307_v30 }
  0x73   :  { %440 = shalt.err (!%p437_p6)
}
  0x74   :  { %s441_s10 = scalar_lea.hbm %s664_s2, 128 }
  0x75   :  { %p442_p7 = scmp.ne.s32.totalorder %s664_s2, %s441_s10  ;;  %p445_p8 = scmp.lt.u32.totalorder %s441_s10, %s664_s2 }
  0x77   :  { %p447_p9 = pnand %p445_p8, %p442_p7 }
  0x79   :  { %450 = shalt.err (!%p447_p9)
}
  0x7a   :  { %319 = dma.vmem_to_hbm [thread:$0]  %s317_s6, 128, %s664_s2, [#allocation4]  }
  0x7b   :  { %455 = dma.done.wait [#allocation4], 128  }
  0x7c   :  { %456 = vsyncadd [#allocation4], 4294967168 }
  0x7d   :  { %323 = vsyncpa [#allocation3], 1 }
  0x7e   :  { %324 = vsyncpa [#allocation6], 1 }
  0x7f   :  { %325 = vsyncpa [#allocation4], 1 }

</bundles_post_ra>
